<compile_context>
chip_gen: v6e
topology: v6e:2x2x1
jax: 0.10.0
libtpu: 0.0.40
codegen_flags: <defaults>
</compile_context>

<pallas_src>
import jax
import jax.numpy as jnp
from jax.experimental import pallas as pl
from jax.experimental.pallas import tpu as pltpu


def _round_up(v, m):
    return ((v + m - 1) // m) * m


def _sublane_multiple(dtype):
    itemsize = jnp.dtype(dtype).itemsize
    return {4: 8, 2: 16, 1: 32}.get(itemsize, 8)


def _vmem_capacity_bytes():
    try:
        return int(pltpu.get_tpu_info().vmem_capacity_bytes)
    except Exception:
        return 64 * 1024 * 1024  # conservative (v7x-sized) fallback


def _num_tensorcores():
    try:
        kind = jax.devices()[0].device_kind.lower()
    except Exception:
        return 1
    return 2 if "v7" in kind else 1


# ----------------------------- kernels --------------------------------------


def _linear_kernel_f32(x_ref, w_ref, b_ref, o_ref):
    """f32 output: accumulate directly into the VMEM-resident output tile."""
    k = pl.program_id(2)
    partial = jnp.dot(x_ref[...], w_ref[...], preferred_element_type=jnp.float32)

    @pl.when(k == 0)
    def _():
        # First K step: direct write (no zero-init pass), bias added once.
        o_ref[...] = partial + b_ref[...].astype(jnp.float32)

    @pl.when(k > 0)
    def _():
        o_ref[...] += partial


def _linear_kernel_acc(x_ref, w_ref, b_ref, o_ref, acc_ref):
    """Low-precision output: f32 scratch accumulator, cast + bias on last step."""
    k = pl.program_id(2)
    partial = jnp.dot(x_ref[...], w_ref[...], preferred_element_type=jnp.float32)

    @pl.when(k == 0)
    def _():
        acc_ref[...] = partial

    @pl.when(k > 0)
    def _():
        acc_ref[...] += partial

    @pl.when(k == pl.num_programs(2) - 1)
    def _():
        o_ref[...] = (acc_ref[...] + b_ref[...].astype(jnp.float32)).astype(o_ref.dtype)


# ----------------------------- wrapper ---------------------------------------


class LinearHead:
    """Pallas-TPU equivalent of `linear_head` (single nn.Linear).

    w_t: [in_feats, out_feats] (transposed PyTorch weight), b: [out_feats].
    Parameters are padded once at construction; only x is padded per call.
    """

    def __init__(self, w_t, b, *, out_dtype=None):
        in_feats, out_feats = w_t.shape
        assert b.shape == (out_feats,)
        self.in_feats, self.out_feats = in_feats, out_feats
        self.param_dtype = jnp.dtype(w_t.dtype)
        self.out_dtype = jnp.dtype(out_dtype) if out_dtype is not None else self.param_dtype

        # ---- generation-dependent tile budget ----
        self.vmem_phys = _vmem_capacity_bytes()
        if self.vmem_phys >= 100 * 1024 * 1024:   # v5e / v6e: 128 MiB VMEM
            tm, tn, tk = 512, 2048, 1024
        else:                                     # v7x: 64 MiB (or unknown)
            tm, tn, tk = 512, 1024, 1024

        # Clamp to the (padded) problem size; keep lane alignment (128).
        self.tn = min(tn, _round_up(out_feats, 128))
        self.tk = min(tk, _round_up(in_feats, 128))
        self.tm_default = tm

        self.N = _round_up(out_feats, self.tn)
        self.K = _round_up(in_feats, self.tk)

        # Pad parameters ONCE (constant across forward calls).
        w_p = w_t
        if (self.K, self.N) != tuple(w_t.shape):
            w_p = jnp.pad(w_t, ((0, self.K - in_feats), (0, self.N - out_feats)))
        b_p = b if self.N == out_feats else jnp.pad(b, (0, self.N - out_feats))
        self.w_p = w_p
        self.b_p = b_p.reshape(1, self.N)

        self.num_tc = _num_tensorcores()

    def __call__(self, x):
        assert x.ndim == 2 and x.shape[1] == self.in_feats
        assert jnp.dtype(x.dtype) == self.param_dtype, "x / weight dtype mismatch"
        batch = x.shape[0]

        # Dtype-aware sublane rounding for the row (tm / M) axis.
        sub = _sublane_multiple(x.dtype)
        tm = min(self.tm_default, _round_up(batch, sub))
        M = _round_up(batch, tm)
        tn, tk, N, K = self.tn, self.tk, self.N, self.K

        # v7x dual-TensorCore: ensure >= 2 blocks along a parallel axis.
        if (self.num_tc > 1 and M // tm == 1 and N // tn == 1
                and N >= 256 and (N // 2) % 128 == 0):
            tn = N // 2

        # Only the (small) activation may need per-call padding.
        x_p = x
        if (M, K) != tuple(x.shape):
            x_p = jnp.pad(x, ((0, M - batch), (0, K - self.in_feats)))

        grid = (M // tm, N // tn, K // tk)

        in_bytes = jnp.dtype(x.dtype).itemsize
        out_bytes = self.out_dtype.itemsize
        out_is_f32 = self.out_dtype == jnp.float32

        # VMEM footprint: double-buffered x / w / out tiles (+ acc scratch, bias).
        footprint = 2 * (tm * tk * in_bytes + tk * tn * in_bytes + tm * tn * out_bytes)
        footprint += 2 * tn * 4
        if not out_is_f32:
            footprint += tm * tn * 4
        vmem_limit = int(footprint * 1.25) + (4 << 20)
        vmem_limit = max(vmem_limit, 16 << 20)
        vmem_limit = min(vmem_limit, int(self.vmem_phys * 0.75))

        # Advisory cost: x is re-read per N block, W per M block.
        bytes_accessed = (
            M * K * in_bytes * (N // tn)
            + K * N * in_bytes * (M // tm)
            + N * 4
            + M * N * out_bytes
        )

        kernel = _linear_kernel_f32 if out_is_f32 else _linear_kernel_acc
        scratch = [] if out_is_f32 else [pltpu.VMEM((tm, tn), jnp.float32)]

        out = pl.pallas_call(
            kernel,
            out_shape=jax.ShapeDtypeStruct((M, N), self.out_dtype),
            grid_spec=pltpu.PrefetchScalarGridSpec(
                num_scalar_prefetch=0,
                grid=grid,
                in_specs=[
                    pl.BlockSpec((tm, tk), lambda i, j, k: (i, k)),   # x tile
                    pl.BlockSpec((tk, tn), lambda i, j, k: (k, j)),   # w_t tile
                    pl.BlockSpec((1, tn), lambda i, j, k: (0, j)),    # bias tile
                ],
                out_specs=pl.BlockSpec((tm, tn), lambda i, j, k: (i, j)),
                scratch_shapes=scratch,
            ),
            compiler_params=pltpu.CompilerParams(
                dimension_semantics=("parallel", "parallel", "arbitrary"),
                vmem_limit_bytes=vmem_limit,
            ),
            cost_estimate=pl.CostEstimate(
                flops=2 * M * N * K,
                transcendentals=0,
                bytes_accessed=bytes_accessed,
            ),
        )(x_p, self.w_p, self.b_p)

        if M != batch or N != self.out_feats:
            out = out[:batch, :self.out_feats]
        return out


def linear_head_forward(x, w_t, b):
    """Functional convenience wrapper (pads W per call via LinearHead init)."""
    return LinearHead(w_t, b)(x)


if __name__ == "__main__":
    # Small shapes consistent with the module: batch=8, in_feats=32, out_feats=16.
    batch, in_feats, out_feats = 8, 32, 16

    key = jax.random.PRNGKey(0)
    kx, kw, kb = jax.random.split(key, 3)

    # --- f32 path (direct-accumulate-into-output kernel) ---
    x = jax.random.normal(kx, (batch, in_feats), dtype=jnp.float32)
    w_t = jax.random.normal(kw, (in_feats, out_feats), dtype=jnp.float32) * 0.1
    b = jax.random.normal(kb, (out_feats,), dtype=jnp.float32) * 0.1

    head = LinearHead(w_t, b)
    y = head(x)
    jax.block_until_ready(y)

    y_ref = x @ w_t + b[None, :]
    assert y.shape == y_ref.shape
    assert jnp.allclose(y, y_ref, atol=1e-4, rtol=1e-4), "f32 mismatch vs reference"

    # --- bf16 path (f32 scratch-accumulator kernel, dtype-aware sublane pad) ---
    x_bf = x.astype(jnp.bfloat16)
    w_bf = w_t.astype(jnp.bfloat16)
    b_bf = b.astype(jnp.bfloat16)

    head_bf = LinearHead(w_bf, b_bf)
    y_bf = head_bf(x_bf)
    jax.block_until_ready(y_bf)

    y_bf_ref = (x_bf.astype(jnp.float32) @ w_bf.astype(jnp.float32)
                + b_bf.astype(jnp.float32)[None, :])
    assert jnp.allclose(y_bf.astype(jnp.float32), y_bf_ref, atol=3e-2, rtol=3e-2), \
        "bf16 mismatch vs reference"

    print("KERNEL_OK")
</pallas_src>

<mosaic_0001>
module attributes {stable_mosaic.version = 11 : i64} {
  func.func @_linear_kernel_f32(%arg0: i32, %arg1: i32, %arg2: i32, %arg3: memref<8x128xf32, #tpu.memory_space<vmem>>, %arg4: memref<128x128xf32, #tpu.memory_space<vmem>>, %arg5: memref<1x128xf32, #tpu.memory_space<vmem>>, %arg6: memref<8x128xf32, #tpu.memory_space<vmem>>) attributes {dimension_semantics = [#tpu.dimension_semantics<parallel>, #tpu.dimension_semantics<parallel>, #tpu.dimension_semantics<arbitrary>], iteration_bounds = array<i64: 1, 1, 1>, scalar_prefetch = 0 : i64, scratch_operands = 0 : i64, tpu.core_type = #tpu.core_type<tc>, window_params = [{transform_indices = @transform_0, window_bounds = array<i64: 8, 128>}, {transform_indices = @transform_1, window_bounds = array<i64: 128, 128>}, {transform_indices = @transform_2, window_bounds = array<i64: 1, 128>}, {transform_indices = @transform_3, window_bounds = array<i64: 8, 128>}]} {
    %c0 = arith.constant 0 : index
    %c0_0 = arith.constant 0 : index
    %0 = vector.load %arg3[%c0, %c0_0] : memref<8x128xf32, #tpu.memory_space<vmem>>, vector<8x128xf32>
    %c0_1 = arith.constant 0 : index
    %c0_2 = arith.constant 0 : index
    %1 = vector.load %arg4[%c0_1, %c0_2] : memref<128x128xf32, #tpu.memory_space<vmem>>, vector<128x128xf32>
    %cst = arith.constant dense<0.000000e+00> : vector<8x128xf32>
    %2 = tpu.matmul %0, %1, %cst {dimension_numbers = #tpu.dot_dimension_numbers<[1], [0], [0], [1], [0, 0, 1, 1], [], []>} : vector<8x128xf32>, vector<128x128xf32>, vector<8x128xf32> -> vector<8x128xf32>
    %c0_i32 = arith.constant 0 : i32
    %3 = arith.cmpi eq, %arg2, %c0_i32 : i32
    %4 = arith.extui %3 : i1 to i32
    %c0_i32_3 = arith.constant 0 : i32
    %5 = arith.cmpi ne, %4, %c0_i32_3 : i32
    scf.if %5 {
      %c0_6 = arith.constant 0 : index
      %c0_7 = arith.constant 0 : index
      %9 = vector.load %arg5[%c0_6, %c0_7] : memref<1x128xf32, #tpu.memory_space<vmem>>, vector<1x128xf32>
      %10 = vector.broadcast %9 : vector<1x128xf32> to vector<8x128xf32>
      %11 = arith.addf %2, %10 : vector<8x128xf32>
      %c0_8 = arith.constant 0 : index
      %c0_9 = arith.constant 0 : index
      %12 = vector.load %arg6[%c0_8, %c0_9] : memref<8x128xf32, #tpu.memory_space<vmem>>, vector<8x128xf32>
      tpu.vector_store %arg6[%c0_8, %c0_9], %11 {strides = array<i32>} : memref<8x128xf32, #tpu.memory_space<vmem>>, vector<8x128xf32>,
    } else {
    }
    %c0_i32_4 = arith.constant 0 : i32
    %6 = arith.cmpi sgt, %arg2, %c0_i32_4 : i32
    %7 = arith.extui %6 : i1 to i32
    %c0_i32_5 = arith.constant 0 : i32
    %8 = arith.cmpi ne, %7, %c0_i32_5 : i32
    scf.if %8 {
      %c0_6 = arith.constant 0 : index
      %c0_7 = arith.constant 0 : index
      %9 = vector.load %arg6[%c0_6, %c0_7] : memref<8x128xf32, #tpu.memory_space<vmem>>, vector<8x128xf32>
      %10 = arith.addf %9, %2 : vector<8x128xf32>
      %c0_8 = arith.constant 0 : index
      %c0_9 = arith.constant 0 : index
      %11 = vector.load %arg6[%c0_8, %c0_9] : memref<8x128xf32, #tpu.memory_space<vmem>>, vector<8x128xf32>
      tpu.vector_store %arg6[%c0_8, %c0_9], %10 {strides = array<i32>} : memref<8x128xf32, #tpu.memory_space<vmem>>, vector<8x128xf32>,
    } else {
    }
    return
  }
  func.func @transform_0(%arg0: i32, %arg1: i32, %arg2: i32) -> (i32, i32) {
    %c0_i32 = arith.constant 0 : i32
    return %arg0, %arg2 : i32, i32
  }
  func.func @transform_1(%arg0: i32, %arg1: i32, %arg2: i32) -> (i32, i32) {
    %c0_i32 = arith.constant 0 : i32
    return %arg2, %arg1 : i32, i32
  }
  func.func @transform_2(%arg0: i32, %arg1: i32, %arg2: i32) -> (i32, i32) {
    %c0_i32 = arith.constant 0 : i32
    %c0_i32_0 = arith.constant 0 : i32
    return %c0_i32, %arg1 : i32, i32
  }
  func.func @transform_3(%arg0: i32, %arg1: i32, %arg2: i32) -> (i32, i32) {
    %c0_i32 = arith.constant 0 : i32
    return %arg0, %arg1 : i32, i32
  }
}

</mosaic_0001>

<bundles_post_ra>
// kernel: tpu_custom_call.1
= control target key start
LH: loop header
LB: loop body
LE: loop exit
PB: predicated region body
PF: predicated region fallthrough
CT: control target
= control target key end

     0   :  { %8 = vsyncpa [#allocation3], 0  ;;  %s329_s0 = inlined_call_operand.hbm [shape: f32[8,128], index: 0, kind: input, shape index: {}]   ;;  %s330_s1 = inlined_call_operand.hbm [shape: f32[128,128], index: 1, kind: input, shape index: {}]   ;;  %s331_s2 = inlined_call_operand.vmem [shape: f32[1,128], index: 2, kind: input, shape index: {}]   ;;  %s332_s3 = inlined_call_operand.hbm [shape: f32[8,128], index: 3, kind: output, shape index: {}]  }
   0x1   :  { %9 = vsyncpa [#allocation6], 0 }
   0x2   :  { %10 = vsyncpa [#allocation4], 0  ;;  %s290_s12 = smov [#allocation2]   ;;  %s291_s14 = smov [#allocation5]  }
   0x3   :  { %s17_s13 = sshll.u32 %s290_s12, 4  ;;  %s26_s15 = sshll.u32 %s291_s14, 4  ;;  %s18_s13 = int_to_ptr.vmem [resolvable:$true] %s17_s13  ;;  %s27_s15 = int_to_ptr.vmem [resolvable:$true] %s26_s15 }
   0x4   :  { %s232_s16 = scalar_lea.vmem %s18_s13, 128  ;;  %p237_p1 = scmp.lt.s32.totalorder %s18_s13, %s18_s13 }
   0x5   :  { %p233_p0 = scmp.ne.s32.totalorder %s18_s13, %s232_s16  ;;  %p238_p2 = scmp.lt.s32.totalorder %s232_s16, %s232_s16 }
   0x7   :  { %p239_p3 = por %p238_p2, %p237_p1 }
   0x9   :  { %p240_p4 = pnand %p239_p3, %p233_p0 }
   0xb   :  { %243 = shalt.err (!%p240_p4)
}
   0xc   :  { %20 = dma.hbm_to_vmem [thread:$0]  %s329_s0, 128, %s18_s13, [#allocation3]  }
   0xd   :  { %s252_s19 = scalar_lea.vmem %s27_s15, 2048  ;;  %p257_p6 = scmp.lt.s32.totalorder %s27_s15, %s27_s15 }
   0xe   :  { %p253_p5 = scmp.ne.s32.totalorder %s27_s15, %s252_s19  ;;  %p258_p7 = scmp.lt.s32.totalorder %s252_s19, %s252_s19 }
  0x10   :  { %p259_p8 = por %p258_p7, %p257_p6 }
  0x12   :  { %p260_p9 = pnand %p259_p8, %p253_p5 }
  0x14   :  { %263 = shalt.err (!%p260_p9)
}
  0x15   :  { %s292_s20 = smov 128   ;;  %s293_s21 = smov 8  }
  0x16   :  { %32 = dma.hbm_to_vmem [thread:$0]  %s330_s1, 2048, %s27_s15, [#allocation6], %s292_s20, %s292_s20, %s293_s21  }
  0x17   :  { %284 = dma.done.wait [#allocation3], 128  }
  0x18   :  { %285 = vsyncadd [#allocation3], 4294967168 }
  0x19   :  { %286 = dma.done.wait [#allocation6], 2048  }
  0x1a   :  { %287 = vsyncadd [#allocation6], 4294965248  ;;  %v294_v0 = vmov 0.0   ;;  %vm295_vm0 = vmmov 0   ;;  %v57_v1 = vld [vmem:[#allocation5 + $0x78] sm:$0xff]  ;;  %v56_v2 = vld [vmem:[#allocation5 + $0x70] sm:$0xff] }
  0x1b   :  { %182 = vmatprep.subr.mxu0 %v294_v0  ;;  %214 = vmatprep.mubr.msk.f32.mxu0 %vm295_vm0, %v294_v0  ;;  %v55_v3 = vld [vmem:[#allocation5 + $0x68] sm:$0xff]  ;;  %v54_v4 = vld [vmem:[#allocation5 + $0x60] sm:$0xff]  ;;  %v53_v5 = vld [vmem:[#allocation5 + $0x58] sm:$0xff]  ;;  %s296_s24 = smov [#allocation7]  }
  0x1c   :  { %183 = vmatpush3.msra.mxu0 %v57_v1  ;;  %v52_v6 = vld [vmem:[#allocation5 + $0x50] sm:$0xff]  ;;  %v51_v7 = vld [vmem:[#allocation5 + $0x48] sm:$0xff]  ;;  %v50_v8 = vld [vmem:[#allocation5 + $0x40] sm:$0xff]  ;;  %s154_s25 = sshll.u32 %s296_s24, 4  ;;  %s155_s25 = int_to_ptr.vmem [resolvable:$true] %s154_s25 }
  0x1d   :  { %184 = vmatprep.subr.mxu0 %v294_v0  ;;  %v49_v9 = vld [vmem:[#allocation5 + $0x38] sm:$0xff]  ;;  %v48_v10 = vld [vmem:[#allocation5 + $0x30] sm:$0xff]  ;;  %v47_v11 = vld [vmem:[#allocation5 + $0x28] sm:$0xff]  ;;  %s264_s26 = scalar_lea.vmem %s155_s25, 128  ;;  %p269_p11 = scmp.lt.s32.totalorder %s155_s25, %s155_s25 }
  0x1e   :  { %185 = vmatpush3.msra.mxu0 %v56_v2  ;;  %v46_v12 = vld [vmem:[#allocation5 + $0x20] sm:$0xff]  ;;  %v45_v13 = vld [vmem:[#allocation5 + $0x18] sm:$0xff]  ;;  %v44_v14 = vld [vmem:[#allocation5 + $0x10] sm:$0xff]  ;;  %p265_p10 = scmp.ne.s32.totalorder %s155_s25, %s264_s26  ;;  %p270_p12 = scmp.lt.s32.totalorder %s264_s26, %s264_s26 }
  0x1f   :  { %186 = vmatprep.subr.mxu0 %v294_v0  ;;  %v43_v15 = vld [vmem:[#allocation5 + $0x8] sm:$0xff]  ;;  %v42_v16 = vld [vmem:[#allocation5] sm:$0xff]  ;;  %v41_v17 = vld [vmem:[#allocation2] sm:$0xff] }
  0x20   :  { %187 = vmatpush3.msra.mxu0 %v55_v3  ;;  %v164_v18 = vld [vmem:[%s331_s2] ss:$0 sm:$0xff]  ;;  %p271_p13 = por %p270_p12, %p269_p11 }
  0x21   :  { %188 = vmatprep.subr.mxu0 %v294_v0 }
  0x22   :  { %189 = vmatpush3.msra.mxu0 %v54_v4  ;;  %p272_p0 = pnand %p271_p13, %p265_p10 }
  0x23   :  { %190 = vmatprep.subr.mxu0 %v294_v0 }
  0x24   :  { %191 = vmatpush3.msra.mxu0 %v53_v5 }
  0x25   :  { %192 = vmatprep.subr.mxu0 %v294_v0 }
  0x26   :  { %193 = vmatpush3.msra.mxu0 %v52_v6 }
  0x27   :  { %194 = vmatprep.subr.mxu0 %v294_v0 }
  0x28   :  { %195 = vmatpush3.msra.mxu0 %v51_v7 }
  0x29   :  { %196 = vmatprep.subr.mxu0 %v294_v0 }
  0x2a   :  { %197 = vmatpush3.msra.mxu0 %v50_v8 }
  0x2b   :  { %198 = vmatprep.subr.mxu0 %v294_v0 }
  0x2c   :  { %199 = vmatpush3.msra.mxu0 %v49_v9 }
  0x2d   :  { %200 = vmatprep.subr.mxu0 %v294_v0 }
  0x2e   :  { %201 = vmatpush3.msra.mxu0 %v48_v10 }
  0x2f   :  { %202 = vmatprep.subr.mxu0 %v294_v0 }
  0x30   :  { %203 = vmatpush3.msra.mxu0 %v47_v11 }
  0x31   :  { %204 = vmatprep.subr.mxu0 %v294_v0 }
  0x32   :  { %205 = vmatpush3.msra.mxu0 %v46_v12 }
  0x33   :  { %206 = vmatprep.subr.mxu0 %v294_v0 }
  0x34   :  { %207 = vmatpush3.msra.mxu0 %v45_v13 }
  0x35   :  { %208 = vmatprep.subr.mxu0 %v294_v0 }
  0x36   :  { %209 = vmatpush3.msra.mxu0 %v44_v14 }
  0x37   :  { %210 = vmatprep.subr.mxu0 %v294_v0 }
  0x38   :  { %211 = vmatpush3.msra.mxu0 %v43_v15 }
  0x39   :  { %212 = vmatprep.subr.mxu0 %v294_v0 }
  0x3a   :  { %213 = vmatpush3.msra.mxu0 %v42_v16 }
  0x3b   :  { %215 = vmatmul.mubr.f32.vlgmr.msra.gmra.mxu0 %v41_v17 }
  0xfb   :  { %v124_v19 = vpop.f32.mrf.mxu0 }
  0xfc   :  { %v139_v20 = vadd.f32 %v164_v18, %v124_v19 }
  0xfd   :  { %v216_v21 = vpop.f32.mrf.mxu0 }
  0xfe   :  { %140 = vst [vmem:[#allocation7] sm:$0xff] %v139_v20 }
  0xff   :  { %275 = shalt.err (!%p272_p0)
}
 0x100   :  { %157 = dma.vmem_to_hbm [thread:$0]  %s155_s25, 128, %s332_s3, [#allocation4]  }
 0x101   :  { %288 = dma.done.wait [#allocation4], 128  }
 0x102   :  { %289 = vsyncadd [#allocation4], 4294967168 }
 0x103   :  { %161 = vsyncpa [#allocation3], 1 }
 0x104   :  { %162 = vsyncpa [#allocation6], 1 }
 0x105   :  { %163 = vsyncpa [#allocation4], 1 }

</bundles_post_ra>
